<compile_context>
chip_gen: v6e
topology: v6e:2x2x1
jax: 0.10.0
libtpu: 0.0.40
codegen_flags: <defaults>
</compile_context>

<pallas_src>
import functools

import jax
import jax.numpy as jnp
from jax.experimental import pallas as pl
from jax.experimental.pallas import tpu as pltpu


# ---------------------------------------------------------------------------
# Device-aware tiling
# ---------------------------------------------------------------------------
_VMEM_LIMIT_BYTES = 32 * 1024 * 1024   # safe on v5e/v6e/v7x; >> tile footprint


def _tile_targets():
    """(tm, tn, tk) targets sized for the local chip's VMEM.

    v5e/v6e (128 MiB VMEM): 512-wide tiles (amortize ~0.35us/step overhead,
    ~85% of HBM roofline).  v7x (64 MiB VMEM) or unknown: conservative 256.
    """
    try:
        vmem = pltpu.get_tpu_info().vmem_capacity_bytes
    except Exception:
        vmem = 64 * 1024 * 1024
    if vmem >= 128 * 1024 * 1024:
        return 512, 512, 512
    return 256, 256, 512


def _pick_tile(dim, target, align):
    """Largest tile <= target that divides `dim` and is a multiple of `align`;
    falls back to the full dim (always legal via the full-array-dim escape)."""
    if dim <= target:
        return dim
    t = (target // align) * align
    while t >= align:
        if dim % t == 0:
            return t
        t -= align
    return dim


# ---------------------------------------------------------------------------
# Kernel 1: slab-fused QKV projection  (B*N, C) @ (3, C, C) -> (3, B*N, C)
# ---------------------------------------------------------------------------
def _qkv_matmul_kernel(x_ref, w_ref, o_ref, acc_ref):
    @pl.when(pl.program_id(3) == 0)
    def _():
        acc_ref[...] = jnp.zeros_like(acc_ref)

    acc_ref[...] += jnp.dot(
        x_ref[...], w_ref[0], preferred_element_type=jnp.float32
    )

    @pl.when(pl.program_id(3) == pl.num_programs(3) - 1)
    def _():
        o_ref[0] = acc_ref[...].astype(o_ref.dtype)


def qkv_projection(x2d, w_qkv):
    M, K = x2d.shape
    S, _, Cout = w_qkv.shape
    tm_t, tn_t, tk_t = _tile_targets()
    tm = _pick_tile(M, tm_t, 8)
    tn = _pick_tile(Cout, tn_t, 128)
    tk = _pick_tile(K, tk_t, 128)

    return pl.pallas_call(
        _qkv_matmul_kernel,
        out_shape=jax.ShapeDtypeStruct((S, M, Cout), x2d.dtype),
        grid_spec=pltpu.PrefetchScalarGridSpec(
            num_scalar_prefetch=0,
            grid=(S, M // tm, Cout // tn, K // tk),
            in_specs=[
                pl.BlockSpec((tm, tk), lambda s, i, j, k: (i, k)),
                pl.BlockSpec((1, tk, tn), lambda s, i, j, k: (s, k, j)),
            ],
            out_specs=pl.BlockSpec((1, tm, tn), lambda s, i, j, k: (s, i, j)),
            scratch_shapes=[pltpu.VMEM((tm, tn), jnp.float32)],
        ),
        compiler_params=pltpu.CompilerParams(
            dimension_semantics=("parallel", "parallel", "parallel", "arbitrary"),
            vmem_limit_bytes=_VMEM_LIMIT_BYTES,
        ),
    )(x2d, w_qkv)


# ---------------------------------------------------------------------------
# Kernel 2: attention, one batch (all heads) per grid step
# ---------------------------------------------------------------------------
def _attn_kernel(qkv_ref, o_ref, *, num_heads, scale):
    # qkv_ref block: (3, 1, N, C); o_ref block: (1, N, C) — lane-dense output.
    n = qkv_ref.shape[2]
    c = qkv_ref.shape[3]
    hd = c // num_heads

    q = qkv_ref[0, 0]          # (N, C)
    k = qkv_ref[1, 0]          # (N, C)
    v = qkv_ref[2, 0]          # (N, C)

    head_outs = []
    for h in range(num_heads):
        lo = h * hd
        qh = q[:, lo:lo + hd]                      # (N, hd)
        kh = k[:, lo:lo + hd]                      # (N, hd)
        vh = v[:, lo:lo + hd]                      # (N, hd)

        # Contract over head_dim without materializing kh.T.
        s = jax.lax.dot_general(
            qh, kh, (((1,), (1,)), ((), ())),
            preferred_element_type=jnp.float32,
        ) * scale                                  # (N, N) f32

        s = s - jnp.max(s, axis=-1, keepdims=True)
        p = jnp.exp(s)
        # approx reciprocal -> EUP slot (otherwise idle here), essentially free.
        p = p * pl.reciprocal(jnp.sum(p, axis=-1, keepdims=True), approx=True)

        # Keep MXU inputs in the value dtype (bf16 fast path if inputs are bf16),
        # accumulate in f32.
        oh = jnp.dot(p.astype(vh.dtype), vh,
                     preferred_element_type=jnp.float32)   # (N, hd)
        head_outs.append(oh)

    # Single full-width (lane-dense) store of the concatenated heads: (N, C).
    o_ref[0] = jnp.concatenate(head_outs, axis=-1).astype(o_ref.dtype)


def mha_core(qkv, num_heads, scale):
    # qkv: (3, B, N, C); output: (B, N, C) with heads concatenated on lanes.
    # TODO(synk): for long sequences (N >~ 512) switch to an online-softmax
    # (flash) variant with a KV-block 'arbitrary' grid axis and m/l/acc scratch,
    # so the (N, N) score tile never exceeds VMEM.
    _, B, N, C = qkv.shape
    return pl.pallas_call(
        functools.partial(_attn_kernel, num_heads=num_heads, scale=scale),
        out_shape=jax.ShapeDtypeStruct((B, N, C), qkv.dtype),
        grid_spec=pltpu.PrefetchScalarGridSpec(
            num_scalar_prefetch=0,
            grid=(B,),
            in_specs=[pl.BlockSpec((3, 1, N, C), lambda b: (0, b, 0, 0))],
            out_specs=pl.BlockSpec((1, N, C), lambda b: (b, 0, 0)),
        ),
        compiler_params=pltpu.CompilerParams(
            dimension_semantics=("parallel",),
            vmem_limit_bytes=_VMEM_LIMIT_BYTES,
        ),
    )(qkv)


# ---------------------------------------------------------------------------
# Kernel 3: output projection with fused bias  (B*N, C) @ (C, C) + b
# ---------------------------------------------------------------------------
def _proj_matmul_kernel(x_ref, w_ref, b_ref, o_ref, acc_ref):
    @pl.when(pl.program_id(2) == 0)
    def _():
        acc_ref[...] = jnp.zeros_like(acc_ref)

    acc_ref[...] += jnp.dot(
        x_ref[...], w_ref[...], preferred_element_type=jnp.float32
    )

    @pl.when(pl.program_id(2) == pl.num_programs(2) - 1)
    def _():
        o_ref[...] = (acc_ref[...] + b_ref[...].astype(jnp.float32)).astype(
            o_ref.dtype
        )


def proj_projection(x2d, w, b):
    M, K = x2d.shape
    _, Nout = w.shape
    tm_t, tn_t, tk_t = _tile_targets()
    tm = _pick_tile(M, tm_t, 8)
    tn = _pick_tile(Nout, tn_t, 128)
    tk = _pick_tile(K, tk_t, 128)

    return pl.pallas_call(
        _proj_matmul_kernel,
        out_shape=jax.ShapeDtypeStruct((M, Nout), x2d.dtype),
        grid_spec=pltpu.PrefetchScalarGridSpec(
            num_scalar_prefetch=0,
            grid=(M // tm, Nout // tn, K // tk),
            in_specs=[
                pl.BlockSpec((tm, tk), lambda i, j, k: (i, k)),
                pl.BlockSpec((tk, tn), lambda i, j, k: (k, j)),
                pl.BlockSpec((1, tn), lambda i, j, k: (0, j)),
            ],
            out_specs=pl.BlockSpec((tm, tn), lambda i, j, k: (i, j)),
            scratch_shapes=[pltpu.VMEM((tm, tn), jnp.float32)],
        ),
        compiler_params=pltpu.CompilerParams(
            dimension_semantics=("parallel", "parallel", "arbitrary"),
            vmem_limit_bytes=_VMEM_LIMIT_BYTES,
        ),
    )(x2d, w, b.reshape(1, Nout))


# ---------------------------------------------------------------------------
# Full module forward
# ---------------------------------------------------------------------------
def attention_forward(x, params, num_heads):
    """Pallas equivalent of Attention.forward (dropout p=0 -> identity)."""
    B, N, C = x.shape
    head_dim = C // num_heads
    scale = head_dim ** (-0.5)

    w_qkv = params["w_qkv"]    # (3, C, C)
    w_proj = params["w_proj"]  # (C, C)
    b_proj = params["b_proj"]  # (C,)

    # QKV projection -> (3, B*N, C), already split into q/k/v slabs.
    qkv = qkv_projection(x.reshape(B * N, C), w_qkv)
    qkv = qkv.reshape(3, B, N, C)          # free (contiguous) reshape

    # Attention: lane-dense (B, N, C) output, no transposes in the wrapper.
    o = mha_core(qkv, num_heads, scale)

    # Output projection with fused bias.
    out = proj_projection(o.reshape(B * N, C), w_proj, b_proj)
    return out.reshape(B, N, C)


# Pure-JAX reference for validation (same math as the PyTorch module).
def attention_reference(x, params, num_heads):
    B, N, C = x.shape
    hd = C // num_heads
    scale = hd ** (-0.5)
    qkv = jnp.einsum("bnc,scd->sbnd", x, params["w_qkv"])   # (3, B, N, C)

    def split_heads(t):  # (B, N, C) -> (B, H, N, hd)
        return t.reshape(B, N, num_heads, hd).transpose(0, 2, 1, 3)

    q, k, v = (split_heads(qkv[i]) for i in range(3))
    attn = (q @ jnp.swapaxes(k, -2, -1)) * scale
    attn = jax.nn.softmax(attn, axis=-1)
    o = (attn @ v).transpose(0, 2, 1, 3).reshape(B, N, C)
    return o @ params["w_proj"] + params["b_proj"]


if __name__ == "__main__":
    # Small shapes consistent with the module: dim=C=32, num_heads=8 -> head_dim=4
    B, N, C = 2, 8, 32
    num_heads = 8

    key = jax.random.PRNGKey(0)
    kx, kq, kp, kb = jax.random.split(key, 4)

    x = jax.random.normal(kx, (B, N, C), dtype=jnp.float32)
    params = {
        # w_qkv[s] == torch qkv.weight[s*C:(s+1)*C, :].T  (qkv_bias=False)
        "w_qkv": jax.random.normal(kq, (3, C, C), dtype=jnp.float32) * 0.05,
        "w_proj": jax.random.normal(kp, (C, C), dtype=jnp.float32) * 0.05,
        "b_proj": jax.random.normal(kb, (C,), dtype=jnp.float32) * 0.01,
    }

    out = attention_forward(x, params, num_heads)
    out = jax.block_until_ready(out)

    ref = attention_reference(x, params, num_heads)
    assert out.shape == (B, N, C)
    max_err = float(jnp.max(jnp.abs(out - ref)))
    # Tolerance slightly loosened vs exact f32 because of approx EUP reciprocal.
    assert jnp.allclose(out, ref, atol=2e-3, rtol=2e-3), (
        f"mismatch vs reference: max abs err {max_err}"
    )

    print("KERNEL_OK")
</pallas_src>

<mosaic_0001>
module attributes {stable_mosaic.version = 11 : i64} {
  func.func @_qkv_matmul_kernel(%arg0: i32, %arg1: i32, %arg2: i32, %arg3: i32, %arg4: memref<16x32xf32, #tpu.memory_space<vmem>>, %arg5: memref<1x32x32xf32, #tpu.memory_space<vmem>>, %arg6: memref<1x16x32xf32, #tpu.memory_space<vmem>>, %arg7: memref<16x32xf32, #tpu.memory_space<vmem>>) attributes {dimension_semantics = [#tpu.dimension_semantics<parallel>, #tpu.dimension_semantics<parallel>, #tpu.dimension_semantics<parallel>, #tpu.dimension_semantics<arbitrary>], iteration_bounds = array<i64: 3, 1, 1, 1>, scalar_prefetch = 0 : i64, scratch_operands = 1 : i64, tpu.core_type = #tpu.core_type<tc>, window_params = [{transform_indices = @transform_0, window_bounds = array<i64: 16, 32>}, {transform_indices = @transform_1, window_bounds = array<i64: 1, 32, 32>}, {transform_indices = @transform_2, window_bounds = array<i64: 1, 16, 32>}]} {
    %c0_i32 = arith.constant 0 : i32
    %0 = arith.cmpi eq, %arg3, %c0_i32 : i32
    %1 = arith.extui %0 : i1 to i32
    %c0_i32_0 = arith.constant 0 : i32
    %2 = arith.cmpi ne, %1, %c0_i32_0 : i32
    scf.if %2 {
      %cst_11 = arith.constant 0.000000e+00 : f32
      %13 = vector.broadcast %cst_11 : f32 to vector<16x32xf32>
      %c0_12 = arith.constant 0 : index
      %c0_13 = arith.constant 0 : index
      %14 = vector.load %arg7[%c0_12, %c0_13] : memref<16x32xf32, #tpu.memory_space<vmem>>, vector<16x32xf32>
      tpu.vector_store %arg7[%c0_12, %c0_13], %13 {strides = array<i32>} : memref<16x32xf32, #tpu.memory_space<vmem>>, vector<16x32xf32>,
    } else {
    }
    %c0 = arith.constant 0 : index
    %c0_1 = arith.constant 0 : index
    %3 = vector.load %arg7[%c0, %c0_1] : memref<16x32xf32, #tpu.memory_space<vmem>>, vector<16x32xf32>
    %c0_2 = arith.constant 0 : index
    %c0_3 = arith.constant 0 : index
    %4 = vector.load %arg4[%c0_2, %c0_3] : memref<16x32xf32, #tpu.memory_space<vmem>>, vector<16x32xf32>
    %c0_4 = arith.constant 0 : index
    %c0_5 = arith.constant 0 : index
    %c0_6 = arith.constant 0 : index
    %5 = vector.load %arg5[%c0_4, %c0_5, %c0_6] : memref<1x32x32xf32, #tpu.memory_space<vmem>>, vector<1x32x32xf32>
    %6 = vector.shape_cast %5 : vector<1x32x32xf32> to vector<32x32xf32>
    %cst = arith.constant dense<0.000000e+00> : vector<16x32xf32>
    %7 = tpu.matmul %4, %6, %cst {dimension_numbers = #tpu.dot_dimension_numbers<[1], [0], [0], [1], [0, 0, 1, 1], [], []>} : vector<16x32xf32>, vector<32x32xf32>, vector<16x32xf32> -> vector<16x32xf32>
    %8 = arith.addf %3, %7 : vector<16x32xf32>
    %c0_7 = arith.constant 0 : index
    %c0_8 = arith.constant 0 : index
    %9 = vector.load %arg7[%c0_7, %c0_8] : memref<16x32xf32, #tpu.memory_space<vmem>>, vector<16x32xf32>
    tpu.vector_store %arg7[%c0_7, %c0_8], %8 {strides = array<i32>} : memref<16x32xf32, #tpu.memory_space<vmem>>, vector<16x32xf32>,
    %c0_i32_9 = arith.constant 0 : i32
    %10 = arith.cmpi eq, %arg3, %c0_i32_9 : i32
    %11 = arith.extui %10 : i1 to i32
    %c0_i32_10 = arith.constant 0 : i32
    %12 = arith.cmpi ne, %11, %c0_i32_10 : i32
    scf.if %12 {
      %c0_11 = arith.constant 0 : index
      %c0_12 = arith.constant 0 : index
      %13 = vector.load %arg7[%c0_11, %c0_12] : memref<16x32xf32, #tpu.memory_space<vmem>>, vector<16x32xf32>
      %c0_13 = arith.constant 0 : index
      %c0_14 = arith.constant 0 : index
      %c0_15 = arith.constant 0 : index
      %14 = vector.load %arg6[%c0_13, %c0_14, %c0_15] : memref<1x16x32xf32, #tpu.memory_space<vmem>>, vector<1x16x32xf32>
      %15 = vector.shape_cast %14 : vector<1x16x32xf32> to vector<16x32xf32>
      %16 = vector.shape_cast %13 : vector<16x32xf32> to vector<1x16x32xf32>
      tpu.vector_store %arg6[%c0_13, %c0_14, %c0_15], %16 {strides = array<i32>} : memref<1x16x32xf32, #tpu.memory_space<vmem>>, vector<1x16x32xf32>,
    } else {
    }
    return
  }
  func.func @transform_0(%arg0: i32, %arg1: i32, %arg2: i32, %arg3: i32) -> (i32, i32) {
    %c0_i32 = arith.constant 0 : i32
    return %arg1, %arg3 : i32, i32
  }
  func.func @transform_1(%arg0: i32, %arg1: i32, %arg2: i32, %arg3: i32) -> (i32, i32, i32) {
    %c0_i32 = arith.constant 0 : i32
    return %arg0, %arg3, %arg2 : i32, i32, i32
  }
  func.func @transform_2(%arg0: i32, %arg1: i32, %arg2: i32, %arg3: i32) -> (i32, i32, i32) {
    %c0_i32 = arith.constant 0 : i32
    return %arg0, %arg1, %arg2 : i32, i32, i32
  }
}

</mosaic_0001>

<bundles_post_ra>
// kernel: tpu_custom_call.1
= control target key start
LH: loop header
LB: loop body
LE: loop exit
PB: predicated region body
PF: predicated region fallthrough
CT: control target
= control target key end

     0   :  { %7 = vsyncpa [#allocation4], 0  ;;  %s937_s0 = inlined_call_operand.hbm [shape: f32[16,32], index: 0, kind: input, shape index: {}]   ;;  %s938_s1 = inlined_call_operand.hbm [shape: f32[3,32,32], index: 1, kind: input, shape index: {}]   ;;  %s939_s2 = inlined_call_operand.hbm [shape: f32[3,16,32], index: 2, kind: output, shape index: {}]  }
   0x1   :  { %8 = vsyncpa [#allocation7], 0 }
   0x2   :  { %10 = vsyncpa [#allocation7 + $0x1], 0 }
   0x3   :  { %11 = vsyncpa [#allocation5], 0 }
   0x4   :  { %13 = vsyncpa [#allocation5 + $0x1], 0  ;;  %s743_s9 = smov 0   ;;  %s745_s10 = smov 0  }
   0x5   :  { %s747_s11 = smov 0   ;;  %s749_s12 = smov 0  }
   0x6   :  { %s751_s13 = smov 0   ;;  %s753_s14 = smov 0  }
   0x7 LB: > { %s464_s15 = sadd.s32 4294967295, %s718_s14   ;;  %s465_s16 = sadd.s32 4294967294, %s718_s14   ;;  %s718_s14 = sphi %s753_s14, %s19_s14   ;;  %s714_s13 = sphi %s751_s13, %s958_s13   ;;  %s710_s12 = sphi %s749_s12, %s957_s12   ;;  %s706_s11 = sphi %s747_s11, %s956_s11   ;;  %s702_s10 = sphi %s745_s10, %s955_s10   ;;  %s698_s9 = sphi %s743_s9, %s954_s9  }
   0x8   : > { %p97_p0 = scmp.ne.s32.totalorder %s702_s10, %s698_s9  ;;  %p777_p1 = scmp.eq.s32.totalorder %s464_s15, 0 }
   0x9   : > { %p781_p2 = scmp.eq.s32.totalorder %s464_s15, 2  ;;  %p131_p3 = scmp.eq.s32.totalorder %s465_s16, 2 }
   0xa   : > { %p787_p4 = por %p777_p1, %p97_p0  ;;  %p466_p5 = scmp.ge.s32.totalorder %s718_s14, 1 }
   0xb   : > { %p792_p6 = por %p131_p3, %p97_p0  ;;  %p138_p7 = scmp.lt.s32.totalorder %s718_s14, 4 }
   0xc   : > { %s720_s22 = smov [#allocation3]   ;;  %s45_s25 = sadd.s32 1, %s714_s13 }
   0xd   : > { %s945_s20 = scalar_select %p792_p6, 1, 0 }
   0xe   : > { %p797_p8 = pnand %p466_p5, %p138_p7  ;;  %s154_s23 = sshll.u32 %s720_s22, 4  ;;  %s155_s23 = int_to_ptr.vmem [resolvable:$true] %s154_s23 }
   0xf   : > { %s591_s26 = scalar_lea.vmem %s155_s23, 256  ;;  %p599_p3 = scmp.lt.s32.totalorder %s155_s23, %s155_s23 }
  0x10   : > { %p510_p9 = pneg %p797_p8  ;;  %p592_p12 = scmp.ne.s32.totalorder %s155_s23, %s591_s26 }
  0x11   : > { %p600_p5 = scmp.lt.s32.totalorder %s591_s26, %s591_s26 }
  0x12   : > { %p805_p10 = pnand %p510_p9, %p777_p1 }
  0x13   : > { %p601_p7 = por %p600_p5, %p599_p3 }
  0x14   : > { %p582_p11 = pneg %p805_p10 }
  0x16   : > { %p594_p13 = pnand %p592_p12, %p582_p11 }
  0x18   : > { %p595_p0 = pneg %p594_p13 }
  0x1a   : > { %p602_p6 = pnand %p601_p7, %p595_p0 }
  0x1c   : > { %605 = shalt.err (!%p602_p6)
}
  0x1d   : > { %s940_s27 = smov 128   ;;  %s722_s28 = smov 8  }
  0x1e   : > { %513 = dma.hbm_to_vmem [thread:$0]  (!%p805_p10), %s937_s0, 256, %s155_s23, [#allocation4], %s940_s27, %s940_s27, %s722_s28  }
  0x1f   : > { %p47_p6 = scmp.ge.s32.totalorder %s45_s25, 3  ;;  %s84_s3 = sadd.s32 1, %s706_s11 }
  0x20   : > { %p91_p9 = scmp.ne.s32.totalorder %s706_s11, %s702_s10  ;;  %p92_p11 = scmp.eq.s32.totalorder %s718_s14, 0 }
  0x21   : > { %s960_s25 = smov (%p47_p6, %s45_s25), 0  ;;  %p523_p0 = scmp.lt.s32.totalorder %s718_s14, 3 }
  0x22   : > { %p826_p12 = por %p92_p11, %p91_p9  ;;  %p832_p13 = por %p781_p2, %p91_p9 }
  0x23   : > { %s77_s6 = ssub.s32 %s714_s13, %s960_s25  ;;  %s168_s7 = sand.u32 1, %s706_s11  }
  0x24   : > { %s949_s5 = scalar_select %p832_p13, 1, 0 }
  0x25   : > { %p82_p10 = scmp.eq.s32.totalorder %s77_s6, 0  ;;  %s469_s8 = sshll.u32 %s168_s7, 5 }
  0x26   : > { %s483_s16 = sshll.u32 %s714_s13, 9  ;;  %s172_s26 = scalar_lea.vmem [#allocation6], %s469_s8 }
  0x27   : > { %s841_s15 = scalar_select %p82_p10, %s706_s11, %s84_s3  }
  0x28   : > { %s181_s24 = scalar_lea.hbm %s938_s1, %s483_s16  ;;  %s182_s29 = sshll.u32 %s172_s26, 4  ;;  %s183_s29 = int_to_ptr.vmem [resolvable:$true] %s182_s29 }
  0x29   : > { %p849_p2 = pnand %p523_p0, %p826_p12  ;;  %s169_s30 = scalar_lea.sflag [#allocation7], %s168_s7 }
  0x2a   : > { %s619_s6 = scalar_lea.vmem %s183_s29, 512  ;;  %s723_s3 = smov [#allocation6]  }
  0x2b   : > { %p608_p3 = pneg %p849_p2  ;;  %p620_p5 = scmp.ne.s32.totalorder %s183_s29, %s619_s6 }
  0x2c   : > { %s624_s27 = sshll.u32 %s723_s3, 4  ;;  %s625_s27 = int_to_ptr.vmem [resolvable:$false] %s624_s27 }
  0x2d   : > { %p622_p7 = pnand %p620_p5, %p608_p3  ;;  %s626_s16 = scalar_lea.vmem %s625_s27, 1024 }
  0x2e   : > { %p627_p9 = scmp.lt.s32.totalorder %s183_s29, %s625_s27  ;;  %p628_p11 = scmp.lt.s32.totalorder %s626_s16, %s619_s6 }
  0x2f   : > { %p623_p6 = pneg %p622_p7 }
  0x30   : > { %p629_p10 = por %p628_p11, %p627_p9 }
  0x32   : > { %p630_p13 = pnand %p629_p10, %p623_p6 }
  0x34   : > { %633 = shalt.err (!%p630_p13)
}
  0x35   : > { %s951_s4 = smov 128   ;;  %194 = sbr.rel (%p797_p8) target bundleno = 291 (0x123), region = 28 }
  0x36   : > { %517 = dma.hbm_to_vmem [thread:$0]  (!%p849_p2), %s181_s24, 512, %s183_s29, %s169_s30, %s951_s4, %s951_s4, %s722_s28  }
  0x3a   : > { %685 = dma.done.wait (%p777_p1), [#allocation4], 256  }
  0x3b   : > { %687 = vsyncadd (%p777_p1), [#allocation4], 4294967040  ;;  %s867_s27 = sand.u32 1, %s702_s10  }
  0x3c   : > { %s474_s7 = sshll.u32 %s867_s27, 5  ;;  %s201_s8 = scalar_lea.sflag [#allocation7], %s867_s27 }
  0x3d   : > { %s204_s22 = scalar_lea.vmem [#allocation6], %s474_s7 }
  0x3e   : > { %689 = dma.done.wait (%p787_p4), %s201_s8, 512  }
  0x3f   : > { %691 = vsyncadd (%p787_p4), %s201_s8, 4294966784  ;;  %vm232_vm0 = vcmask 261120   ;;  %v724_v0 = vmov 0.0   ;;  %v242_v1 = vld [vmem:[%s204_s22 + $0x18] sm:$0xff]  ;;  %v241_v2 = vld [vmem:[%s204_s22 + $0x10] sm:$0xff]  ;;  %s475_s17 = sshll.u32 %s867_s27, 4 }
  0x40   : > { %234 = vst.msk [vmem:[#allocation2 + $0x8] sm:$0xff] %vm232_vm0, %v724_v0  ;;  %233 = vst.msk [vmem:[#allocation2] sm:$0xff] %vm232_vm0, %v724_v0  ;;  %491 = vmatprep.subr.mxu0 %v242_v1  ;;  %v237_v3 = vld [vmem:[#allocation3] sm:$0xff]  ;;  %v240_v4 = vld [vmem:[%s204_s22 + $0x8] sm:$0xff]  ;;  %s484_s19 = sshll.u32 %s710_s12, 8  ;;  %s224_s21 = scalar_lea.vmem [#allocation8], %s475_s17 }
  0x41   : > { %492 = vmatpush3.msra.mxu0 %v242_v1  ;;  %499 = vmatprep.mubr.msk.f32.mxu0 %vm232_vm0, %v237_v3  ;;  %v239_v5 = vld [vmem:[%s204_s22] sm:$0xff]  ;;  %v238_v6 = vld [vmem:[#allocation3 + $0x8] sm:$0xff]  ;;  %s353_s28 = sshll.u32 %s224_s21, 4  ;;  %s886_s26 = scalar_lea.hbm %s939_s2, %s484_s19  ;;  %s888_s28 = int_to_ptr.vmem [resolvable:$true] %s353_s28 }
  0x42   : > { %493 = vmatprep.subr.mxu0 %v241_v2  ;;  %s337_s29 = scalar_lea.sflag [#allocation5], %s867_s27  ;;  %s634_s12 = scalar_lea.vmem %s888_s28, 256 }
  0x43   : > { %494 = vmatpush3.msra.mxu0 %v241_v2  ;;  %p635_p1 = scmp.ne.s32.totalorder %s888_s28, %s634_s12  ;;  %p952_p4 = scmp.ne.s32.totalorder %s949_s5, 0 }
  0x44   : > { %495 = vmatprep.subr.mxu0 %v240_v4  ;;  %s725_s18 = smov [#allocation8]  }
  0x45   : > { %496 = vmatpush3.msra.mxu0 %v240_v4  ;;  %p636_p8 = pnand %p635_p1, %p952_p4  ;;  %s638_s30 = sshll.u32 %s725_s18, 4  ;;  %s639_s30 = int_to_ptr.vmem [resolvable:$false] %s638_s30 }
  0x46   : > { %497 = vmatprep.subr.mxu0 %v239_v5  ;;  %s640_s6 = scalar_lea.vmem %s639_s30, 512  ;;  %p641_p13 = scmp.lt.s32.totalorder %s888_s28, %s639_s30 }
  0x47   : > { %498 = vmatpush3.msra.mxu0 %v239_v5  ;;  %v236_v7 = vld [vmem:[#allocation2 + $0x8] sm:$0xff]  ;;  %v235_v9 = vld [vmem:[#allocation2] sm:$0xff]  ;;  %p637_p12 = pneg %p636_p8  ;;  %p642_p0 = scmp.lt.s32.totalorder %s640_s6, %s634_s12 }
  0x48   : > { %500 = vmatmul.mubr.msk.f32.vlgmr.msra.gmra.mxu0 %vm232_vm0, %v238_v6 }
  0x49   : > { %p643_p2 = por %p642_p0, %p641_p13 }
  0x4b   : > { %p644_p3 = pnand %p643_p2, %p637_p12 }
 0x108   : > { %v501_v8 = vpop.f32.mrf.mxu0 }
 0x109   : > { %v326_v10 = vadd.f32 %v501_v8, %v236_v7 }
 0x10a   : > { %v316_v11 = vpop.f32.mrf.mxu0 }
 0x10b   : > { %328 = vst.msk [vmem:[#allocation2 + $0x8] sm:$0xff] %vm232_vm0, %v326_v10  ;;  %v325_v12 = vadd.f32 %v316_v11, %v235_v9 }
 0x10d   : > { %327 = vst.msk [vmem:[#allocation2] sm:$0xff] %vm232_vm0, %v325_v12 }
 0x112   : > { %v333_v13 = vld [vmem:[#allocation2 + $0x8] sm:$0xff] }
 0x113   : > { %335 = vst.msk [vmem:[%s224_s21 + $0x8] sm:$0xff] %vm232_vm0, %v333_v13 }
 0x114   : > { %v332_v14 = vld [vmem:[#allocation2] sm:$0xff] }
 0x115   : > { %334 = vst.msk [vmem:[%s224_s21] sm:$0xff] %vm232_vm0, %v332_v14 }
 0x116   : > { %647 = shalt.err (!%p644_p3)
}
 0x117   : > { %s648_s3 = scalar_lea.hbm %s886_s26, 256  ;;  %s652_s7 = scalar_lea.hbm %s939_s2, 768 }
 0x118   : > { %p649_p5 = scmp.ne.s32.totalorder %s886_s26, %s648_s3  ;;  %p653_p9 = scmp.lt.s32.totalorder %s886_s26, %s939_s2 }
 0x119   : > { %p654_p11 = scmp.lt.s32.totalorder %s652_s7, %s648_s3 }
 0x11a   : > { %p650_p7 = pnand %p649_p5, %p952_p4 }
 0x11b   : > { %p655_p10 = por %p654_p11, %p653_p9 }
 0x11c   : > { %p651_p6 = pneg %p650_p7 }
 0x11e   : > { %p656_p1 = pnand %p655_p10, %p651_p6 }
 0x120   : > { %659 = shalt.err (!%p656_p1)
}
 0x121   : > { %s726_s17 = smov 128   ;;  %s727_s19 = smov 8  }
 0x122   : > { %508 = dma.vmem_to_hbm [thread:$0]  (%p952_p4), %s888_s28, 256, %s886_s26, %s337_s29, %s726_s17, %s726_s17, %s727_s19  }
 0x123 PF: > { %p525_p8 = scmp.ge.s32.totalorder %s718_s14, 2  ;;  %s368_s21 = sand.u32 1, %s698_s9  }
 0x124   : > { %p953_p12 = scmp.ne.s32.totalorder %s945_s20, 0  ;;  %s369_s23 = scalar_lea.sflag [#allocation5], %s368_s21 }
 0x126   : > { %p519_p13 = pnand %p525_p8, %p953_p12 }
 0x128   : > { %p520_p0 = pneg %p519_p13 }
 0x12a   : > { %693 = dma.done.wait (%p520_p0), %s369_s23, 256  }
 0x12b   : > { %695 = vsyncadd (%p520_p0), %s369_s23, 4294967040  ;;  %s19_s14 = sadd.s32 1, %s718_s14   ;;  %s954_s9 = smov %s702_s10 }
 0x12c   : > { %p16_p2 = scmp.ge.s32.totalorder %s19_s14, 5   ;;  %s955_s10 = smov %s706_s11 }
 0x12d   : > { %s956_s11 = smov %s841_s15  ;;  %s957_s12 = smov %s714_s13 }
 0x12e   : > { %s958_s13 = smov %s960_s25  ;;  %18 = sbr.rel (!%p16_p2) target bundleno = 7 (0x7), region = 87 }
 0x133   :  { %374 = vsyncpa [#allocation4], 1 }
 0x134   :  { %376 = vsyncpa [#allocation4 + $0x1], 1 }
 0x135   :  { %377 = vsyncpa [#allocation7], 1 }
 0x136   :  { %379 = vsyncpa [#allocation7 + $0x1], 1 }
 0x137   :  { %380 = vsyncpa [#allocation5], 1 }
 0x138   :  { %382 = vsyncpa [#allocation5 + $0x1], 1 }

</bundles_post_ra>
